<compile_context>
chip_gen: v6e
topology: v6e:2x2x1
jax: 0.10.0
libtpu: 0.0.40
codegen_flags: <defaults>
</compile_context>

<pallas_src>
import math
import jax
import jax.numpy as jnp
from jax.experimental import pallas as pl
from jax.experimental.pallas import tpu as pltpu


# ---------------- Fused Pallas kernel ----------------

def _fused_kernel(x_ref, rep_ref, wc0e_ref, wc1e_ref, bce_ref,
                  w1t_ref, b1_ref, w2r_ref, b2_ref, o_ref):
    # x_ref   : (B, 2, L)   input block (NCL layout, as in PyTorch Conv1d)
    # rep_ref : (L, 128)    0/1 replication matrix, rep[l, j] = (j % L == l)
    # wc?e_ref: (L, 128)    conv weights expanded into view order
    # bce_ref : (L, 128)    conv bias expanded into view order
    # w1t_ref : (128, 64)   fc1 weight (transposed)
    # b1_ref  : (1, 64)     fc1 bias
    # w2r_ref : (1, 64)     fc2 weight row
    # b2_ref  : (1,) SMEM   fc2 bias scalar
    # o_ref   : (B, L)      fc2 output; out row (n, p) == view row n*L + p
    B = x_ref.shape[0]
    L = x_ref.shape[2]

    # ---- pointwise conv (Cin=2) + ReLU, produced directly in `.view(-1,128)` order.
    x0 = x_ref[:, 0, :]                                              # (B, L)
    x1 = x_ref[:, 1, :]                                              # (B, L)
    rep = rep_ref[...]                                               # (L, 128)
    # lane replication: xt?[b, j] = x?[b, j % L]  (tiny K=L matmul, exact 0/1 weights)
    xt0 = jnp.dot(x0, rep, preferred_element_type=jnp.float32)       # (B, 128)
    xt1 = jnp.dot(x1, rep, preferred_element_type=jnp.float32)       # (B, 128)
    h = (xt0.reshape(B, 1, 128) * wc0e_ref[...].reshape(1, L, 128)
         + xt1.reshape(B, 1, 128) * wc1e_ref[...].reshape(1, L, 128)
         + bce_ref[...].reshape(1, L, 128))                          # (B, L, 128) on VPU
    h = jnp.maximum(h, 0.0)
    h2 = h.reshape(B * L, 128)                      # == torch `.view(-1, 128)` rows

    # ---- fc1 (MXU, K=128) + ReLU
    a1 = jnp.dot(h2, w1t_ref[...], preferred_element_type=jnp.float32) + b1_ref[...]
    a1 = jnp.maximum(a1, 0.0)                                        # (B*L, 64)

    # ---- fc2: VPU multiply + lane (XLU) reduction, keep MXU free / avoid 1-col matmul
    a1_3 = a1.reshape(B, L, 64)
    y = jnp.sum(a1_3 * w2r_ref[...].reshape(1, 1, 64), axis=-1)      # (B, L)
    o_ref[...] = y + b2_ref[0]                                       # scalar bias from SMEM


# ---------------- Host-side helpers ----------------

def _expand_conv_params(wc, bc, L):
    """Expand conv weights/bias into the PyTorch view(-1,128) column order.

    For view row p and column j (with G = 128 // L):
      channel c = p*G + j//L,  position l = j % L
    so  wc?e[p, j] = wc[p*G + j//L, ?],  bce[p, j] = bc[p*G + j//L].
    """
    G = 128 // L

    def expand(v):                                   # v: (128,) -> (L, 128)
        return jnp.broadcast_to(v.reshape(L, G, 1), (L, G, L)).reshape(L, 128)

    rep = (jnp.arange(128)[None, :] % L == jnp.arange(L)[:, None]).astype(jnp.float32)
    return rep, expand(wc[:, 0]), expand(wc[:, 1]), expand(bc)


# ---------------- Forward pass ----------------

def cnn_forecast_forward(x, params, block_rows=2048):
    """x: (N, 2, L) float32, NCL layout as in PyTorch Conv1d. Returns (N*L, 1)."""
    N, Cin, L = x.shape
    assert Cin == 2
    assert 128 % L == 0, "fused kernel assumes L divides 128"
    # TODO(synk): general L (128 % L != 0) would need a transpose-based regroup path.

    wc, bc, w1, b1, w2, b2 = (params[k] for k in ("wc", "bc", "w1", "b1", "w2", "b2"))
    rep, wc0e, wc1e, bce = _expand_conv_params(wc, bc, L)

    # Pick a sample-block size: ~block_rows rows of the (.,128) activation per
    # grid step (>=512 rows reaches ~85% of HBM roofline; fits scoped VMEM on
    # v5e/v6e/v7x with double buffering).
    cap = max(1, block_rows // L)
    if N <= cap:
        B_blk, Np = N, N                     # single block: full-dim block is always legal
    else:
        B_blk = max(8, (cap // 8) * 8)       # keep the sublane dim 8-aligned
        Np = pl.cdiv(N, B_blk) * B_blk
    x_p = x if Np == N else jnp.pad(x, ((0, Np - N), (0, 0), (0, 0)))

    out2d = pl.pallas_call(
        _fused_kernel,
        out_shape=jax.ShapeDtypeStruct((Np, L), jnp.float32),
        grid=(Np // B_blk,),
        in_specs=[
            pl.BlockSpec((B_blk, 2, L), lambda i: (i, 0, 0)),   # x block
            pl.BlockSpec((L, 128), lambda i: (0, 0)),           # rep   (VMEM-resident)
            pl.BlockSpec((L, 128), lambda i: (0, 0)),           # wc0e
            pl.BlockSpec((L, 128), lambda i: (0, 0)),           # wc1e
            pl.BlockSpec((L, 128), lambda i: (0, 0)),           # bce
            pl.BlockSpec((128, 64), lambda i: (0, 0)),          # w1^T
            pl.BlockSpec((1, 64), lambda i: (0, 0)),            # b1
            pl.BlockSpec((1, 64), lambda i: (0, 0)),            # w2 row
            pl.BlockSpec(memory_space=pltpu.MemorySpace.SMEM),  # b2 scalar
        ],
        out_specs=pl.BlockSpec((B_blk, L), lambda i: (i, 0)),
        compiler_params=pltpu.CompilerParams(
            dimension_semantics=("parallel",),
            vmem_limit_bytes=32 * 1024 * 1024,
        ),
    )(x_p, rep, wc0e, wc1e, bce, w1.T, b1.reshape(1, -1), w2.reshape(1, -1), b2)

    out2d = out2d[:N] if Np != N else out2d
    return out2d.reshape(N * L, 1)          # row r = n*L + p, matching torch .view order


# ---------------- Pure-JAX reference (for a correctness check) ----------------

def _reference(x, params):
    wc, bc, w1, b1, w2, b2 = (params[k] for k in ("wc", "bc", "w1", "b1", "w2", "b2"))
    h = jnp.maximum(jnp.einsum("ncl,oc->nol", x, wc) + bc[None, :, None], 0.0)  # (N,128,L)
    hf = h.reshape(-1, 128)                                                     # torch view
    a1 = jnp.maximum(hf @ w1.T + b1[None, :], 0.0)
    return a1 @ w2.T + b2[None, :]


# ---------------- Deterministic parameter init ----------------

def init_params(key):
    ks = jax.random.split(key, 6)

    def u(k, shape, fan_in):
        bound = 1.0 / math.sqrt(fan_in)
        return jax.random.uniform(k, shape, jnp.float32, -bound, bound)

    return {
        "wc": u(ks[0], (128, 2), 2),     # Conv1d weight (out, in) with k=1 squeezed
        "bc": u(ks[1], (128,), 2),
        "w1": u(ks[2], (64, 128), 128),  # fc1
        "b1": u(ks[3], (64,), 128),
        "w2": u(ks[4], (1, 64), 64),     # fc2
        "b2": u(ks[5], (1,), 64),
    }


if __name__ == "__main__":
    key = jax.random.PRNGKey(0)
    k_x, k_p = jax.random.split(key)
    N, L = 4, 8
    x = jax.random.normal(k_x, (N, 2, L), dtype=jnp.float32)
    params = init_params(k_p)

    out = cnn_forecast_forward(x, params)
    jax.block_until_ready(out)

    assert out.shape == (N * L, 1), out.shape
    ref = _reference(x, params)
    assert jnp.allclose(out, ref, rtol=2e-3, atol=2e-3), "mismatch vs reference"
    print("KERNEL_OK")
</pallas_src>

<mosaic_0001>
module attributes {stable_mosaic.version = 11 : i64} {
  func.func @_fused_kernel(%arg0: i32, %arg1: memref<4x2x8xf32, #tpu.memory_space<vmem>>, %arg2: memref<8x128xf32, #tpu.memory_space<vmem>>, %arg3: memref<8x128xf32, #tpu.memory_space<vmem>>, %arg4: memref<8x128xf32, #tpu.memory_space<vmem>>, %arg5: memref<8x128xf32, #tpu.memory_space<vmem>>, %arg6: memref<128x64xf32, #tpu.memory_space<vmem>>, %arg7: memref<1x64xf32, #tpu.memory_space<vmem>>, %arg8: memref<1x64xf32, #tpu.memory_space<vmem>>, %arg9: memref<1xf32, #tpu.memory_space<smem>>, %arg10: memref<4x8xf32, #tpu.memory_space<vmem>>) attributes {dimension_semantics = [#tpu.dimension_semantics<parallel>], iteration_bounds = array<i64: 1>, scalar_prefetch = 0 : i64, scratch_operands = 0 : i64, tpu.core_type = #tpu.core_type<tc>, window_params = [{transform_indices = @transform_0, window_bounds = array<i64: 4, 2, 8>}, {pipeline_mode = #tpu.pipeline_mode<synchronous>, transform_indices = @transform_1, window_bounds = array<i64: 8, 128>}, {pipeline_mode = #tpu.pipeline_mode<synchronous>, transform_indices = @transform_2, window_bounds = array<i64: 8, 128>}, {pipeline_mode = #tpu.pipeline_mode<synchronous>, transform_indices = @transform_3, window_bounds = array<i64: 8, 128>}, {pipeline_mode = #tpu.pipeline_mode<synchronous>, transform_indices = @transform_4, window_bounds = array<i64: 8, 128>}, {pipeline_mode = #tpu.pipeline_mode<synchronous>, transform_indices = @transform_5, window_bounds = array<i64: 128, 64>}, {pipeline_mode = #tpu.pipeline_mode<synchronous>, transform_indices = @transform_6, window_bounds = array<i64: 1, 64>}, {pipeline_mode = #tpu.pipeline_mode<synchronous>, transform_indices = @transform_7, window_bounds = array<i64: 1, 64>}, {transform_indices = @transform_8, window_bounds = array<i64: 1>}, {transform_indices = @transform_9, window_bounds = array<i64: 4, 8>}]} {
    %c0 = arith.constant 0 : index
    %c0_0 = arith.constant 0 : index
    %c0_1 = arith.constant 0 : index
    %0 = vector.load %arg1[%c0, %c0_0, %c0_1] : memref<4x2x8xf32, #tpu.memory_space<vmem>>, vector<4x1x8xf32>
    %1 = vector.shape_cast %0 : vector<4x1x8xf32> to vector<4x8xf32>
    %c0_2 = arith.constant 0 : index
    %c1 = arith.constant 1 : index
    %c0_3 = arith.constant 0 : index
    %2 = vector.load %arg1[%c0_2, %c1, %c0_3] : memref<4x2x8xf32, #tpu.memory_space<vmem>>, vector<4x1x8xf32>
    %3 = vector.shape_cast %2 : vector<4x1x8xf32> to vector<4x8xf32>
    %c0_4 = arith.constant 0 : index
    %c0_5 = arith.constant 0 : index
    %4 = vector.load %arg2[%c0_4, %c0_5] : memref<8x128xf32, #tpu.memory_space<vmem>>, vector<8x128xf32>
    %cst = arith.constant dense<0.000000e+00> : vector<4x128xf32>
    %5 = tpu.matmul %1, %4, %cst {dimension_numbers = #tpu.dot_dimension_numbers<[1], [0], [0], [1], [0, 0, 1, 1], [], []>} : vector<4x8xf32>, vector<8x128xf32>, vector<4x128xf32> -> vector<4x128xf32>
    %cst_6 = arith.constant dense<0.000000e+00> : vector<4x128xf32>
    %6 = tpu.matmul %3, %4, %cst_6 {dimension_numbers = #tpu.dot_dimension_numbers<[1], [0], [0], [1], [0, 0, 1, 1], [], []>} : vector<4x8xf32>, vector<8x128xf32>, vector<4x128xf32> -> vector<4x128xf32>
    %7 = vector.shape_cast %5 : vector<4x128xf32> to vector<4x1x128xf32>
    %c0_7 = arith.constant 0 : index
    %c0_8 = arith.constant 0 : index
    %8 = vector.load %arg3[%c0_7, %c0_8] : memref<8x128xf32, #tpu.memory_space<vmem>>, vector<8x128xf32>
    %9 = vector.shape_cast %8 : vector<8x128xf32> to vector<1x8x128xf32>
    %10 = vector.broadcast %7 : vector<4x1x128xf32> to vector<4x8x128xf32>
    %11 = vector.broadcast %9 : vector<1x8x128xf32> to vector<4x8x128xf32>
    %12 = arith.mulf %10, %11 : vector<4x8x128xf32>
    %13 = vector.shape_cast %6 : vector<4x128xf32> to vector<4x1x128xf32>
    %c0_9 = arith.constant 0 : index
    %c0_10 = arith.constant 0 : index
    %14 = vector.load %arg4[%c0_9, %c0_10] : memref<8x128xf32, #tpu.memory_space<vmem>>, vector<8x128xf32>
    %15 = vector.shape_cast %14 : vector<8x128xf32> to vector<1x8x128xf32>
    %16 = vector.broadcast %13 : vector<4x1x128xf32> to vector<4x8x128xf32>
    %17 = vector.broadcast %15 : vector<1x8x128xf32> to vector<4x8x128xf32>
    %18 = arith.mulf %16, %17 : vector<4x8x128xf32>
    %19 = arith.addf %12, %18 : vector<4x8x128xf32>
    %c0_11 = arith.constant 0 : index
    %c0_12 = arith.constant 0 : index
    %20 = vector.load %arg5[%c0_11, %c0_12] : memref<8x128xf32, #tpu.memory_space<vmem>>, vector<8x128xf32>
    %21 = vector.shape_cast %20 : vector<8x128xf32> to vector<1x8x128xf32>
    %22 = vector.broadcast %21 : vector<1x8x128xf32> to vector<4x8x128xf32>
    %23 = arith.addf %19, %22 : vector<4x8x128xf32>
    %cst_13 = arith.constant 0.000000e+00 : f32
    %24 = vector.broadcast %cst_13 : f32 to vector<4x8x128xf32>
    %25 = arith.maximumf %23, %24 : vector<4x8x128xf32>
    %26 = vector.shape_cast %25 : vector<4x8x128xf32> to vector<32x128xf32>
    %c0_14 = arith.constant 0 : index
    %c0_15 = arith.constant 0 : index
    %27 = vector.load %arg6[%c0_14, %c0_15] : memref<128x64xf32, #tpu.memory_space<vmem>>, vector<128x64xf32>
    %cst_16 = arith.constant dense<0.000000e+00> : vector<32x64xf32>
    %28 = tpu.matmul %26, %27, %cst_16 {dimension_numbers = #tpu.dot_dimension_numbers<[1], [0], [0], [1], [0, 0, 1, 1], [], []>} : vector<32x128xf32>, vector<128x64xf32>, vector<32x64xf32> -> vector<32x64xf32>
    %c0_17 = arith.constant 0 : index
    %c0_18 = arith.constant 0 : index
    %29 = vector.load %arg7[%c0_17, %c0_18] : memref<1x64xf32, #tpu.memory_space<vmem>>, vector<1x64xf32>
    %30 = vector.broadcast %29 : vector<1x64xf32> to vector<32x64xf32>
    %31 = arith.addf %28, %30 : vector<32x64xf32>
    %cst_19 = arith.constant 0.000000e+00 : f32
    %32 = vector.broadcast %cst_19 : f32 to vector<32x64xf32>
    %33 = arith.maximumf %31, %32 : vector<32x64xf32>
    %34 = vector.shape_cast %33 : vector<32x64xf32> to vector<4x8x64xf32>
    %c0_20 = arith.constant 0 : index
    %c0_21 = arith.constant 0 : index
    %35 = vector.load %arg8[%c0_20, %c0_21] : memref<1x64xf32, #tpu.memory_space<vmem>>, vector<1x64xf32>
    %36 = vector.shape_cast %35 : vector<1x64xf32> to vector<1x1x64xf32>
    %37 = vector.broadcast %36 : vector<1x1x64xf32> to vector<4x8x64xf32>
    %38 = arith.mulf %34, %37 : vector<4x8x64xf32>
    %cst_22 = arith.constant dense<0.000000e+00> : vector<4x8xf32>
    %39 = vector.multi_reduction <add>, %38, %cst_22 [2] : vector<4x8x64xf32> to vector<4x8xf32>
    %c0_23 = arith.constant 0 : index
    %40 = memref.load %arg9[%c0_23] : memref<1xf32, #tpu.memory_space<smem>>
    %41 = vector.broadcast %40 : f32 to vector<4x8xf32>
    %42 = arith.addf %39, %41 : vector<4x8xf32>
    %c0_24 = arith.constant 0 : index
    %c0_25 = arith.constant 0 : index
    %43 = vector.load %arg10[%c0_24, %c0_25] : memref<4x8xf32, #tpu.memory_space<vmem>>, vector<4x8xf32>
    tpu.vector_store %arg10[%c0_24, %c0_25], %42 {strides = array<i32>} : memref<4x8xf32, #tpu.memory_space<vmem>>, vector<4x8xf32>,
    return
  }
  func.func @transform_0(%arg0: i32) -> (i32, i32, i32) {
    %c0_i32 = arith.constant 0 : i32
    %c0_i32_0 = arith.constant 0 : i32
    %c0_i32_1 = arith.constant 0 : i32
    return %arg0, %c0_i32, %c0_i32_0 : i32, i32, i32
  }
  func.func @transform_1(%arg0: i32) -> (i32, i32) {
    %c0_i32 = arith.constant 0 : i32
    %c0_i32_0 = arith.constant 0 : i32
    %c0_i32_1 = arith.constant 0 : i32
    return %c0_i32, %c0_i32_0 : i32, i32
  }
  func.func @transform_2(%arg0: i32) -> (i32, i32) {
    %c0_i32 = arith.constant 0 : i32
    %c0_i32_0 = arith.constant 0 : i32
    %c0_i32_1 = arith.constant 0 : i32
    return %c0_i32, %c0_i32_0 : i32, i32
  }
  func.func @transform_3(%arg0: i32) -> (i32, i32) {
    %c0_i32 = arith.constant 0 : i32
    %c0_i32_0 = arith.constant 0 : i32
    %c0_i32_1 = arith.constant 0 : i32
    return %c0_i32, %c0_i32_0 : i32, i32
  }
  func.func @transform_4(%arg0: i32) -> (i32, i32) {
    %c0_i32 = arith.constant 0 : i32
    %c0_i32_0 = arith.constant 0 : i32
    %c0_i32_1 = arith.constant 0 : i32
    return %c0_i32, %c0_i32_0 : i32, i32
  }
  func.func @transform_5(%arg0: i32) -> (i32, i32) {
    %c0_i32 = arith.constant 0 : i32
    %c0_i32_0 = arith.constant 0 : i32
    %c0_i32_1 = arith.constant 0 : i32
    return %c0_i32, %c0_i32_0 : i32, i32
  }
  func.func @transform_6(%arg0: i32) -> (i32, i32) {
    %c0_i32 = arith.constant 0 : i32
    %c0_i32_0 = arith.constant 0 : i32
    %c0_i32_1 = arith.constant 0 : i32
    return %c0_i32, %c0_i32_0 : i32, i32
  }
  func.func @transform_7(%arg0: i32) -> (i32, i32) {
    %c0_i32 = arith.constant 0 : i32
    %c0_i32_0 = arith.constant 0 : i32
    %c0_i32_1 = arith.constant 0 : i32
    return %c0_i32, %c0_i32_0 : i32, i32
  }
  func.func @transform_8(%arg0: i32) -> i32 {
    %c0_i32 = arith.constant 0 : i32
    %c0_i32_0 = arith.constant 0 : i32
    return %c0_i32 : i32
  }
  func.func @transform_9(%arg0: i32) -> (i32, i32) {
    %c0_i32 = arith.constant 0 : i32
    %c0_i32_0 = arith.constant 0 : i32
    return %arg0, %c0_i32 : i32, i32
  }
}

</mosaic_0001>

<bundles_post_ra>
// kernel: tpu_custom_call.1
= control target key start
LH: loop header
LB: loop body
LE: loop exit
PB: predicated region body
PF: predicated region fallthrough
CT: control target
= control target key end

     0   :  { %vm48_vm0 = vcmask 1041409   ;;  %v642_v2 = vmov 0.0   ;;  %vm643_vm1 = vmmov 0   ;;  %vm51_vm2 = vcmask 1042434   ;;  %s810_s0 = inlined_call_operand.vmem [shape: f32[4,2,8], index: 0, kind: input, shape index: {}]   ;;  %s811_s1 = inlined_call_operand.vmem [shape: f32[8,128], index: 1, kind: input, shape index: {}]   ;;  %s812_s2 = inlined_call_operand.vmem [shape: f32[8,128], index: 2, kind: input, shape index: {}]   ;;  %s813_s3 = inlined_call_operand.vmem [shape: f32[8,128], index: 3, kind: input, shape index: {}]   ;;  %s814_s4 = inlined_call_operand.vmem [shape: f32[8,128], index: 4, kind: input, shape index: {}]   ;;  %s815_s5 = inlined_call_operand.vmem [shape: f32[128,64], index: 5, kind: input, shape index: {}]   ;;  %s816_s6 = inlined_call_operand.vmem [shape: f32[1,64], index: 6, kind: input, shape index: {}]   ;;  %s817_s7 = inlined_call_operand.vmem [shape: f32[1,64], index: 7, kind: input, shape index: {}]   ;;  %s818_s8 = inlined_call_operand.<no memory space> [shape: f32[1], index: 8, kind: input, shape index: {}]   ;;  %s819_s9 = inlined_call_operand.hbm [shape: f32[4,8], index: 9, kind: output, shape index: {}]  }
   0x1   :  { %v42_v0 = vld [vmem:[%s811_s1] sm:$0xff]  ;;  %536 = vmatprep.subr.mxu0 %v642_v2  ;;  %541 = vmatprep.subr.mxu1 %v642_v2  ;;  %vm54_vm3 = vcmask 1043459   ;;  %vm56_vm4 = vcmask 64512   ;;  %v339_v16 = vld [vmem:[%s815_s5 + $0x78] sm:$0xff]  ;;  %v338_v21 = vld [vmem:[%s815_s5 + $0x70] sm:$0xff] }
   0x2   :  { %v34_v1 = vld [vmem:[%s810_s0] sm:$0x1]  ;;  %v35_v3 = vld [vmem:[%s810_s0 + $0x2] sm:$0x1]  ;;  %v36_v4 = vld [vmem:[%s810_s0 + $0x4] sm:$0x1]  ;;  %537 = vmatpush3.msra.mxu0 %v42_v0  ;;  %538 = vmatprep.mubr.msk.f32.mxu0 %vm643_vm1, %v642_v2 }
   0x3   :  { %v37_v5 = vld [vmem:[%s810_s0 + $0x6] sm:$0x1]  ;;  %v47_v6 = vrot.slane %v35_v3, 7  ;;  %v50_v7 = vrot.slane %v36_v4, 6  ;;  %v38_v9 = vld [vmem:[%s810_s0 + $0x1] sm:$0x1]  ;;  %542 = vmatpush3.msra.mxu1 %v42_v0  ;;  %543 = vmatprep.mubr.msk.f32.mxu1 %vm643_vm1, %v642_v2 }
   0x4   :  { %v53_v8 = vrot.slane %v37_v5, 5  ;;  %v39_v10 = vld [vmem:[%s810_s0 + $0x3] sm:$0x1]  ;;  %v40_v11 = vld [vmem:[%s810_s0 + $0x5] sm:$0x1]  ;;  %546 = vmatprep.subr.mxu0 %v339_v16  ;;  %584 = vmatprep.subr.mxu1 %v339_v16 }
   0x5   :  { %v49_v12 = vsel %vm48_vm0, %v47_v6, %v34_v1  ;;  %v41_v13 = vld [vmem:[%s810_s0 + $0x7] sm:$0x1]  ;;  %v133_v14 = vrot.slane %v39_v10, 7  ;;  %v135_v15 = vrot.slane %v40_v11, 6 }
   0x6   :  { %v52_v17 = vsel %vm51_vm2, %v50_v7, %v49_v12  ;;  %v137_v18 = vrot.slane %v41_v13, 5 }
   0x7   :  { %v55_v19 = vsel %vm54_vm3, %v53_v8, %v52_v17  ;;  %v134_v20 = vsel %vm48_vm0, %v133_v14, %v38_v9 }
   0x8   :  { %539 = vmatmul.mubr.msk.f32.vlgmr.msra.gmra.mxu0 %vm56_vm4, %v55_v19  ;;  %v136_v22 = vsel %vm51_vm2, %v135_v15, %v134_v20 }
   0x9   :  { %15 = vsyncpa [#allocation4], 0  ;;  %v138_v23 = vsel %vm54_vm3, %v137_v18, %v136_v22  ;;  %547 = vmatpush3.msra.mxu0 %v339_v16  ;;  %v337_v24 = vld [vmem:[%s815_s5 + $0x68] sm:$0xff]  ;;  %v336_v25 = vld [vmem:[%s815_s5 + $0x60] sm:$0xff]  ;;  %v644_v38 = vmov 1966171168   ;;  %v215_v40 = vlaneseq }
   0xa   :  { %544 = vmatmul.mubr.msk.f32.vlgmr.msra.gmra.mxu1 %vm56_vm4, %v138_v23  ;;  %548 = vmatprep.subr.mxu0 %v338_v21  ;;  %v335_v26 = vld [vmem:[%s815_s5 + $0x58] sm:$0xff]  ;;  %v334_v27 = vld [vmem:[%s815_s5 + $0x50] sm:$0xff]  ;;  %v333_v28 = vld [vmem:[%s815_s5 + $0x48] sm:$0xff]  ;;  %v213_v39 = vunpack.c.l.s4 %v644_v38  ;;  %vm447_vm5 = vcmask 523264   ;;  %vm492_vm6 = vcmask 60416  }
   0xb   :  { %600 = vmatpush3.msra.mxu1 %v339_v16  ;;  %549 = vmatpush3.msra.mxu0 %v338_v21  ;;  %v332_v29 = vld [vmem:[%s815_s5 + $0x40] sm:$0xff]  ;;  %v331_v30 = vld [vmem:[%s815_s5 + $0x38] sm:$0xff]  ;;  %v330_v31 = vld [vmem:[%s815_s5 + $0x30] sm:$0xff]  ;;  %v780_v42 = vshrl.u32 %v215_v40, 7 }
   0xc   :  { %585 = vmatprep.subr.mxu1 %v338_v21  ;;  %550 = vmatprep.subr.mxu0 %v337_v24  ;;  %v329_v32 = vld [vmem:[%s815_s5 + $0x28] sm:$0xff]  ;;  %v328_v33 = vld [vmem:[%s815_s5 + $0x20] sm:$0xff]  ;;  %v327_v34 = vld [vmem:[%s815_s5 + $0x18] sm:$0xff]  ;;  %v214_v41 = vunpack.c.0.s8 %v213_v39 }
   0xd   :  { %601 = vmatpush3.msra.mxu1 %v338_v21  ;;  %551 = vmatpush3.msra.mxu0 %v337_v24  ;;  %v326_v35 = vld [vmem:[%s815_s5 + $0x10] sm:$0xff]  ;;  %v325_v36 = vld [vmem:[%s815_s5 + $0x8] sm:$0xff]  ;;  %v324_v37 = vld [vmem:[%s815_s5] sm:$0xff]  ;;  %v239_v46 = vsub.s32 0, %v780_v42 }
   0xe   :  { %586 = vmatprep.subr.mxu1 %v337_v24  ;;  %552 = vmatprep.subr.mxu0 %v336_v25  ;;  %v217_v43 = vsub.s32 %v214_v41, %v780_v42  ;;  %v236_v55 = vld [vmem:[%s812_s2] sm:$0xff] }
   0xf   :  { %602 = vmatpush3.msra.mxu1 %v337_v24  ;;  %553 = vmatpush3.msra.mxu0 %v336_v25  ;;  %v286_v62 = vld [vmem:[%s813_s3] sm:$0xff] }
  0x10   :  { %587 = vmatprep.subr.mxu1 %v336_v25  ;;  %554 = vmatprep.subr.mxu0 %v335_v26  ;;  %v315_v11 = vld [vmem:[%s814_s4] sm:$0xff] }
  0x11   :  { %603 = vmatpush3.msra.mxu1 %v336_v25  ;;  %555 = vmatpush3.msra.mxu0 %v335_v26  ;;  %v511_v39 = vld [vmem:[%s817_s7] ss:$0 sm:$0xff]  ;;  %s645_s7 = smov [#allocation3]  }
  0x12   :  { %588 = vmatprep.subr.mxu1 %v335_v26  ;;  %556 = vmatprep.subr.mxu0 %v334_v27  ;;  %s500_s19 = sshll.u32 %s645_s7, 4  ;;  %s501_s19 = int_to_ptr.vmem [resolvable:$true] %s500_s19 }
  0x13   :  { %604 = vmatpush3.msra.mxu1 %v335_v26  ;;  %557 = vmatpush3.msra.mxu0 %v334_v27  ;;  %p625_p1 = scmp.lt.s32.totalorder %s501_s19, %s501_s19 }
  0x14   :  { %589 = vmatprep.subr.mxu1 %v334_v27  ;;  %558 = vmatprep.subr.mxu0 %v333_v28 }
  0x15   :  { %605 = vmatpush3.msra.mxu1 %v334_v27  ;;  %559 = vmatpush3.msra.mxu0 %v333_v28 }
  0x16   :  { %590 = vmatprep.subr.mxu1 %v333_v28  ;;  %560 = vmatprep.subr.mxu0 %v332_v29 }
  0x17   :  { %606 = vmatpush3.msra.mxu1 %v333_v28  ;;  %561 = vmatpush3.msra.mxu0 %v332_v29  ;;  %v510_v28 = vld [vmem:[%s816_s6] ss:$0 sm:$0xff] }
  0x18   :  { %591 = vmatprep.subr.mxu1 %v332_v29  ;;  %562 = vmatprep.subr.mxu0 %v331_v30 }
  0x19   :  { %607 = vmatpush3.msra.mxu1 %v332_v29  ;;  %563 = vmatpush3.msra.mxu0 %v331_v30 }
  0x1a   :  { %592 = vmatprep.subr.mxu1 %v331_v30  ;;  %564 = vmatprep.subr.mxu0 %v330_v31 }
  0x1b   :  { %608 = vmatpush3.msra.mxu1 %v331_v30  ;;  %565 = vmatpush3.msra.mxu0 %v330_v31 }
  0x1c   :  { %593 = vmatprep.subr.mxu1 %v330_v31  ;;  %566 = vmatprep.subr.mxu0 %v329_v32 }
  0x1d   :  { %609 = vmatpush3.msra.mxu1 %v330_v31  ;;  %567 = vmatpush3.msra.mxu0 %v329_v32 }
  0x1e   :  { %594 = vmatprep.subr.mxu1 %v329_v32  ;;  %568 = vmatprep.subr.mxu0 %v328_v33 }
  0x1f   :  { %610 = vmatpush3.msra.mxu1 %v329_v32  ;;  %569 = vmatpush3.msra.mxu0 %v328_v33 }
  0x20   :  { %595 = vmatprep.subr.mxu1 %v328_v33  ;;  %570 = vmatprep.subr.mxu0 %v327_v34 }
  0x21   :  { %611 = vmatpush3.msra.mxu1 %v328_v33  ;;  %571 = vmatpush3.msra.mxu0 %v327_v34 }
  0x22   :  { %596 = vmatprep.subr.mxu1 %v327_v34  ;;  %572 = vmatprep.subr.mxu0 %v326_v35 }
  0x23   :  { %612 = vmatpush3.msra.mxu1 %v327_v34  ;;  %573 = vmatpush3.msra.mxu0 %v326_v35 }
  0x24   :  { %597 = vmatprep.subr.mxu1 %v326_v35  ;;  %574 = vmatprep.subr.mxu0 %v325_v36 }
  0x25   :  { %613 = vmatpush3.msra.mxu1 %v326_v35  ;;  %575 = vmatpush3.msra.mxu0 %v325_v36 }
  0x26   :  { %598 = vmatprep.subr.mxu1 %v325_v36  ;;  %576 = vmatprep.subr.mxu0 %v324_v37 }
  0x27   :  { %614 = vmatpush3.msra.mxu1 %v325_v36  ;;  %577 = vmatpush3.msra.mxu0 %v324_v37 }
  0x28   :  { %599 = vmatprep.subr.mxu1 %v324_v37 }
  0x29   :  { %615 = vmatpush3.msra.mxu1 %v324_v37 }
  0xc8   :  { %v125_v44 = vpop.f32.mrf.mxu0 }
  0xc9   :  { %v218_v45 = vrot.slane %v125_v44, %v217_v43 }
  0xca   :  { %v207_v47 = vpop.f32.mrf.mxu1  ;;  %v540_v48 = vpop.f32.mrf.mxu0 }
  0xcb   :  { %v219_v49 = vcombine.high %v218_v45, %v218_v45  ;;  %v226_v50 = vrot.slane %v218_v45, %v217_v43  ;;  %v268_v51 = vrot.slane %v207_v47, %v217_v43 }
  0xcc   :  { %v545_v52 = vpop.f32.mrf.mxu1 }
  0xcd   :  { %v233_v53 = vrot.slane %v219_v49, %v217_v43  ;;  %v234_v54 = vcombine.high %v226_v50, %v226_v50  ;;  %v240_v56 = vrot.slane %v226_v50, %v239_v46  ;;  %v269_v57 = vcombine.high %v268_v51, %v268_v51 }
  0xce   :  { %v276_v58 = vrot.slane %v268_v51, %v217_v43  ;;  %v471_v52 = vand.u32 127, %v215_v40 }
  0xcf   :  { %v235_v59 = vcombine.high %v233_v53, %v233_v53  ;;  %v244_v60 = vrot.slane %v233_v53, %v239_v46  ;;  %v248_v61 = vrot.slane %v234_v54, %v239_v46  ;;  %v257_v63 = vmul.f32 %v240_v56, %v236_v55 }
  0xd0   :  { %v283_v0 = vrot.slane %v269_v57, %v217_v43  ;;  %v284_v1 = vcombine.high %v276_v58, %v276_v58  ;;  %v290_v2 = vrot.slane %v276_v58, %v239_v46  ;;  %v461_v53 = vstv %s818_s8  ;;  %s620_s8 = scalar_lea.vmem %s501_s19, 64 }
  0xd1   :  { %v252_v3 = vrot.slane %v235_v59, %v239_v46  ;;  %v258_v4 = vmul.f32 %v244_v60, %v236_v55  ;;  %v259_v5 = vmul.f32 %v248_v61, %v236_v55  ;;  %v474_v56 = vsub.s32 %v471_v52, %v780_v42  ;;  %p621_p0 = scmp.ne.s32.totalorder %s501_s19, %s620_s8  ;;  %p626_p2 = scmp.lt.s32.totalorder %s620_s8, %s620_s8 }
  0xd2   :  { %v285_v6 = vcombine.high %v283_v0, %v283_v0  ;;  %v294_v7 = vrot.slane %v283_v0, %v239_v46  ;;  %v298_v8 = vrot.slane %v284_v1, %v239_v46  ;;  %v307_v9 = vmul.f32 %v290_v2, %v286_v62 }
  0xd3   :  { %v260_v10 = vmul.f32 %v252_v3, %v236_v55  ;;  %p627_p3 = por %p626_p2, %p625_p1 }
  0xd4   :  { %v302_v12 = vrot.slane %v285_v6, %v239_v46  ;;  %v308_v13 = vmul.f32 %v294_v7, %v286_v62  ;;  %v311_v14 = vadd.f32 %v307_v9, %v257_v63  ;;  %v309_v15 = vmul.f32 %v298_v8, %v286_v62 }
  0xd5   :  { %p628_p4 = pnand %p627_p3, %p621_p0 }
  0xd6   :  { %v310_v16 = vmul.f32 %v302_v12, %v286_v62  ;;  %v316_v17 = vadd.f32 %v315_v11, %v311_v14  ;;  %v312_v18 = vadd.f32 %v308_v13, %v258_v4  ;;  %v313_v19 = vadd.f32 %v309_v15, %v259_v5 }
  0xd8   :  { %v320_v20 = vmax.f32 %v316_v17, 0.0  ;;  %v317_v21 = vadd.f32 %v315_v11, %v312_v18  ;;  %v318_v22 = vadd.f32 %v315_v11, %v313_v19  ;;  %v314_v23 = vadd.f32 %v310_v16, %v260_v10 }
  0xda   :  { %578 = vmatprep.mubr.f32.mxu0 %v320_v20  ;;  %v321_v24 = vmax.f32 %v317_v21, 0.0  ;;  %v322_v25 = vmax.f32 %v318_v22, 0.0  ;;  %v319_v26 = vadd.f32 %v315_v11, %v314_v23 }
  0xdc   :  { %579 = vmatmul.mubr.f32.vlgmr.msra.gmra.mxu0 %v321_v24  ;;  %581 = vmatprep.mubr.f32.mxu1 %v322_v25  ;;  %v323_v27 = vmax.f32 %v319_v26, 0.0 }
  0xde   :  { %582 = vmatmul.mubr.f32.vlgmr.msra.gmra.mxu1 %v323_v27 }
 0x19c   :  { %v580_v29 = vpop.f32.mrf.mxu0 }
 0x19d   :  { %v419_v30 = vadd.f32 %v580_v29, %v510_v28 }
 0x19e   :  { %v413_v31 = vpop.f32.mrf.mxu0  ;;  %v583_v32 = vpop.f32.mrf.mxu1 }
 0x19f   :  { %v414_v33 = vadd.f32 %v510_v28, %v413_v31  ;;  %v429_v34 = vadd.f32 %v583_v32, %v510_v28  ;;  %v433_v36 = vmax.f32 %v419_v30, 0.0 }
 0x1a0   :  { %v423_v35 = vpop.f32.mrf.mxu1 }
 0x1a1   :  { %v432_v37 = vmax.f32 %v414_v33, 0.0  ;;  %v424_v38 = vadd.f32 %v510_v28, %v423_v35  ;;  %v435_v41 = vmax.f32 %v429_v34, 0.0  ;;  %v444_v47 = vmul.f32 %v511_v39, %v433_v36 }
 0x1a3   :  { %v434_v43 = vmax.f32 %v424_v38, 0.0  ;;  %v443_v44 = vmul.f32 %v511_v39, %v432_v37  ;;  %v446_v49 = vmul.f32 %v511_v39, %v435_v41  ;;  %v451_v50 = vsel %vm447_vm5, %v444_v47, 0.0 }
 0x1a5   :  { %v448_v45 = vsel %vm447_vm5, %v443_v44, 0.0  ;;  %v445_v46 = vmul.f32 %v511_v39, %v434_v43  ;;  %v457_v51 = vsel %vm447_vm5, %v446_v49, 0.0 }
 0x1a6   :  { %449 = vadd.xlane.f32.xlu0 %v448_v45 }
 0x1a7   :  { %v454_v48 = vsel %vm447_vm5, %v445_v46, 0.0 }
 0x1a8   :  { %455 = vadd.xlane.f32.xlu1 %v454_v48 }
 0x1aa   :  { %452 = vadd.xlane.f32.xlu0 %v451_v50 }
 0x1ac   :  { %458 = vadd.xlane.f32.xlu1 %v457_v51 }
 0x22f   :  { %v450_v54 = vpop.xlane.xlu0 %449 }
 0x230   :  { %v462_v57 = vadd.f32 %v461_v53, %v450_v54 }
 0x231   :  { %v456_v55 = vpop.xlane.xlu1 %455 }
 0x232   :  { %v464_v58 = vadd.f32 %v461_v53, %v456_v55  ;;  %v475_v62 = vrot.slane %v462_v57, %v474_v56 }
 0x233   :  { %v453_v59 = vpop.xlane.xlu0 %452 }
 0x234   :  { %v463_v60 = vadd.f32 %v461_v53, %v453_v59  ;;  %v483_v1 = vrot.slane %v464_v58, %v474_v56 }
 0x235   :  { %v459_v61 = vpop.xlane.xlu1 %458 }
 0x236   :  { %v479_v63 = vrot.slane %v463_v60, %v474_v56  ;;  %v465_v0 = vadd.f32 %v461_v53, %v459_v61 }
 0x238   :  { %v488_v40 = vsel %vm48_vm0, %v479_v63, %v475_v62  ;;  %v487_v2 = vrot.slane %v465_v0, %v474_v56 }
 0x239   :  { %v489_v3 = vsel %vm51_vm2, %v483_v1, %v488_v40 }
 0x23a   :  { %v490_v42 = vsel %vm54_vm3, %v487_v2, %v489_v3 }
 0x23b   :  { %493 = vst.msk [vmem:[#allocation3] sm:$0xf] %vm492_vm6, %v490_v42 }
 0x23c   :  { %631 = shalt.err (!%p628_p4)
}
 0x23d   :  { %503 = dma.vmem_to_hbm [thread:$0]  %s501_s19, 64, %s819_s9, [#allocation4]  }
 0x23e   :  { %640 = dma.done.wait [#allocation4], 64  }
 0x23f   :  { %641 = vsyncadd [#allocation4], 4294967232 }
 0x240   :  { %507 = vsyncpa [#allocation4], 1 }

</bundles_post_ra>
